<compile_context>
chip_gen: v6e
topology: v6e:2x2x1
jax: 0.10.0
libtpu: 0.0.40
codegen_flags: <defaults>
</compile_context>

<pallas_src>
import functools

import jax
import jax.numpy as jnp
from jax.experimental import pallas as pl
from jax.experimental.pallas import tpu as pltpu

K_IN = 784        # input features
H1 = 128          # hidden 1
H2 = 64           # true hidden 2
H2_PAD = 128      # lane-dense hidden 2
N_OUT = 10        # true number of classes
N_PAD = 128       # lane-dense logits width
NEG_BIG = -1e9    # bias value for padded logit columns (exp -> 0)


def mlp_kernel(x_ref, w1_ref, b1_ref, w2_ref, b2_ref, w3_ref, b3_ref, o_ref):
    # Cast the f32 input tile to bf16 in-kernel (avoids a separate XLA pad/cast pass
    # over x in HBM).
    x = x_ref[...].astype(jnp.bfloat16)                          # (tm, 784)

    # Layer 1: (tm,784) bf16 @ (784,128) bf16 -> f32, + bias, ReLU.
    h1 = jnp.dot(x, w1_ref[...], preferred_element_type=jnp.float32)
    h1 = jnp.maximum(h1 + b1_ref[...], 0.0).astype(jnp.bfloat16)

    # Layer 2 (H2 padded 64->128 with zeros; exact): (tm,128) @ (128,128).
    h2 = jnp.dot(h1, w2_ref[...], preferred_element_type=jnp.float32)
    h2 = jnp.maximum(h2 + b2_ref[...], 0.0).astype(jnp.bfloat16)

    # Output layer: (tm,128) @ (128,128) -> f32; padded class columns get -1e9 bias.
    logits = jnp.dot(h2, w3_ref[...], preferred_element_type=jnp.float32)
    logits = logits + b3_ref[...]

    # Numerically stable softmax over the 128-wide (padded) class axis.
    # Exact division (not the approx EUP reciprocal) so rows sum to 1 tightly.
    m = jnp.max(logits, axis=1, keepdims=True)
    e = jnp.exp(logits - m)
    denom = jnp.sum(e, axis=1, keepdims=True)
    o_ref[...] = (e / denom).astype(o_ref.dtype)


def prepare_params(w1, b1, w2, b2, w3, b3):
    """One-time preprocessing: bf16 weights, H2 64->128 pad, classes 10->128 pad."""
    w1p = w1.astype(jnp.bfloat16)                                          # (784,128)
    b1p = b1.astype(jnp.float32).reshape(1, H1)
    # Pad H2 with zero columns/rows: ReLU(0 + 0) = 0, so results are exact.
    w2p = jnp.zeros((H1, H2_PAD), jnp.bfloat16).at[:, :H2].set(w2.astype(jnp.bfloat16))
    b2p = jnp.zeros((1, H2_PAD), jnp.float32).at[:, :H2].set(b2.reshape(1, H2))
    # Pad class axis 10 -> 128; padded bias columns get -1e9 so exp underflows to 0.
    w3p = jnp.zeros((H2_PAD, N_PAD), jnp.bfloat16).at[:H2, :N_OUT].set(
        w3.astype(jnp.bfloat16))
    b3p = jnp.full((1, N_PAD), NEG_BIG, jnp.float32).at[:, :N_OUT].set(
        b3.reshape(1, N_OUT))
    return (w1p, b1p, w2p, b2p, w3p, b3p)


def _round_up(n, m):
    return ((n + m - 1) // m) * m


def _pick_tile(batch, max_tm):
    # 16 = bf16 sublane pack.  Small batches: one snug tile (no 8x padding waste).
    # Large batches: big tiles (amortize ~0.35us/step grid overhead) but at least
    # 2 grid steps so both v7x TensorCores get work.
    if batch <= 16:
        return 16
    return max(16, min(max_tm, _round_up(pl.cdiv(batch, 2), 16)))


@functools.partial(jax.jit, static_argnames=("max_tm",))
def net_forward(x, params, *, max_tm=512):
    """x: (B, 784) float32 -> (B, 10) float32 softmax probabilities."""
    w1p, b1p, w2p, b2p, w3p, b3p = params
    B = x.shape[0]
    tm = _pick_tile(B, max_tm)
    Bp = _round_up(B, tm)
    n_tiles = Bp // tm
    if Bp != B:
        # Row-pad only (no K pad, no dtype cast) — only when B isn't a tile multiple.
        x = jnp.pad(x, ((0, Bp - B), (0, 0)))

    def resident(shape):
        # Full-array block with constant block index -> DMA'd once, stays resident in
        # VMEM across every batch tile.
        return pl.BlockSpec(shape, lambda i: tuple(0 for _ in shape))

    out_padded = pl.pallas_call(
        mlp_kernel,
        out_shape=jax.ShapeDtypeStruct((Bp, N_PAD), jnp.bfloat16),
        grid_spec=pltpu.PrefetchScalarGridSpec(
            num_scalar_prefetch=0,
            grid=(n_tiles,),
            in_specs=[
                pl.BlockSpec((tm, K_IN), lambda i: (i, 0)),        # x tile (f32, K=784)
                resident((K_IN, H1)), resident((1, H1)),           # w1, b1
                resident((H1, H2_PAD)), resident((1, H2_PAD)),     # w2, b2
                resident((H2_PAD, N_PAD)), resident((1, N_PAD)),   # w3, b3
            ],
            out_specs=pl.BlockSpec((tm, N_PAD), lambda i: (i, 0)),
        ),
        compiler_params=pltpu.CompilerParams(
            dimension_semantics=("parallel",),   # shards batch tiles across TCs on v7x
            vmem_limit_bytes=32 * 1024 * 1024,
        ),
    )(x, w1p, b1p, w2p, b2p, w3p, b3p)

    return out_padded[:B, :N_OUT].astype(jnp.float32)


def ref_forward(x, params):
    """Pure-JAX reference using the exact same bf16 / padded parameters."""
    w1p, b1p, w2p, b2p, w3p, b3p = params
    xb = x.astype(jnp.bfloat16)
    h1 = jnp.maximum(jnp.dot(xb, w1p, preferred_element_type=jnp.float32) + b1p, 0.0)
    h1 = h1.astype(jnp.bfloat16)
    h2 = jnp.maximum(jnp.dot(h1, w2p, preferred_element_type=jnp.float32) + b2p, 0.0)
    h2 = h2.astype(jnp.bfloat16)
    logits = jnp.dot(h2, w3p, preferred_element_type=jnp.float32) + b3p
    return jax.nn.softmax(logits, axis=1)[:, :N_OUT]


def init_linear(key, fan_in, fan_out):
    # Deterministic init mimicking PyTorch's default uniform(-1/sqrt(fan_in), +).
    kw, kb = jax.random.split(key)
    bound = 1.0 / jnp.sqrt(jnp.float32(fan_in))
    w = jax.random.uniform(kw, (fan_in, fan_out), jnp.float32, -bound, bound)
    b = jax.random.uniform(kb, (1, fan_out), jnp.float32, -bound, bound)
    return w, b


if __name__ == "__main__":
    key = jax.random.PRNGKey(0)
    kx, k1, k2, k3 = jax.random.split(key, 4)

    w1, b1 = init_linear(k1, K_IN, H1)
    w2, b2 = init_linear(k2, H1, H2)
    w3, b3 = init_linear(k3, H2, N_OUT)
    params = prepare_params(w1, b1, w2, b2, w3, b3)

    # Exercise both the single-tile (B=16, grid=1) and multi-tile (B=48 -> tm=32,
    # grid=2, padded rows) paths.
    for B in (16, 48):
        x = jax.random.normal(jax.random.fold_in(kx, B), (B, K_IN), jnp.float32)
        out = jax.block_until_ready(net_forward(x, params))
        ref = ref_forward(x, params)
        assert out.shape == (B, N_OUT)
        # bf16 matmul inputs + bf16 output store -> generous but meaningful tolerances.
        assert jnp.allclose(out, ref, atol=8e-3, rtol=2e-2), (
            float(jnp.max(jnp.abs(out - ref))))
        # Exact softmax normalization (modulo bf16 output rounding).
        assert jnp.allclose(jnp.sum(out, axis=1), 1.0, atol=2e-2)

    print("KERNEL_OK")
</pallas_src>

<mosaic_0001>
module attributes {stable_mosaic.version = 11 : i64} {
  func.func @mlp_kernel(%arg0: i32, %arg1: memref<16x784xf32, #tpu.memory_space<vmem>>, %arg2: memref<784x128xbf16, #tpu.memory_space<vmem>>, %arg3: memref<1x128xf32, #tpu.memory_space<vmem>>, %arg4: memref<128x128xbf16, #tpu.memory_space<vmem>>, %arg5: memref<1x128xf32, #tpu.memory_space<vmem>>, %arg6: memref<128x128xbf16, #tpu.memory_space<vmem>>, %arg7: memref<1x128xf32, #tpu.memory_space<vmem>>, %arg8: memref<16x128xbf16, #tpu.memory_space<vmem>>) attributes {dimension_semantics = [#tpu.dimension_semantics<parallel>], iteration_bounds = array<i64: 1>, scalar_prefetch = 0 : i64, scratch_operands = 0 : i64, tpu.core_type = #tpu.core_type<tc>, window_params = [{transform_indices = @transform_0, window_bounds = array<i64: 16, 784>}, {pipeline_mode = #tpu.pipeline_mode<synchronous>, transform_indices = @transform_1, window_bounds = array<i64: 784, 128>}, {pipeline_mode = #tpu.pipeline_mode<synchronous>, transform_indices = @transform_2, window_bounds = array<i64: 1, 128>}, {pipeline_mode = #tpu.pipeline_mode<synchronous>, transform_indices = @transform_3, window_bounds = array<i64: 128, 128>}, {pipeline_mode = #tpu.pipeline_mode<synchronous>, transform_indices = @transform_4, window_bounds = array<i64: 1, 128>}, {pipeline_mode = #tpu.pipeline_mode<synchronous>, transform_indices = @transform_5, window_bounds = array<i64: 128, 128>}, {pipeline_mode = #tpu.pipeline_mode<synchronous>, transform_indices = @transform_6, window_bounds = array<i64: 1, 128>}, {transform_indices = @transform_7, window_bounds = array<i64: 16, 128>}]} {
    %c0 = arith.constant 0 : index
    %c0_0 = arith.constant 0 : index
    %0 = vector.load %arg1[%c0, %c0_0] : memref<16x784xf32, #tpu.memory_space<vmem>>, vector<16x784xf32>
    %1 = arith.truncf %0 : vector<16x784xf32> to vector<16x784xbf16>
    %c0_1 = arith.constant 0 : index
    %c0_2 = arith.constant 0 : index
    %2 = vector.load %arg2[%c0_1, %c0_2] : memref<784x128xbf16, #tpu.memory_space<vmem>>, vector<784x128xbf16>
    %cst = arith.constant dense<0.000000e+00> : vector<16x128xf32>
    %3 = tpu.matmul %1, %2, %cst {dimension_numbers = #tpu.dot_dimension_numbers<[1], [0], [0], [1], [0, 0, 1, 1], [], []>} : vector<16x784xbf16>, vector<784x128xbf16>, vector<16x128xf32> -> vector<16x128xf32>
    %c0_3 = arith.constant 0 : index
    %c0_4 = arith.constant 0 : index
    %4 = vector.load %arg3[%c0_3, %c0_4] : memref<1x128xf32, #tpu.memory_space<vmem>>, vector<1x128xf32>
    %5 = vector.broadcast %4 : vector<1x128xf32> to vector<16x128xf32>
    %6 = arith.addf %3, %5 : vector<16x128xf32>
    %cst_5 = arith.constant 0.000000e+00 : f32
    %7 = vector.broadcast %cst_5 : f32 to vector<16x128xf32>
    %8 = arith.maximumf %6, %7 : vector<16x128xf32>
    %9 = arith.truncf %8 : vector<16x128xf32> to vector<16x128xbf16>
    %c0_6 = arith.constant 0 : index
    %c0_7 = arith.constant 0 : index
    %10 = vector.load %arg4[%c0_6, %c0_7] : memref<128x128xbf16, #tpu.memory_space<vmem>>, vector<128x128xbf16>
    %cst_8 = arith.constant dense<0.000000e+00> : vector<16x128xf32>
    %11 = tpu.matmul %9, %10, %cst_8 {dimension_numbers = #tpu.dot_dimension_numbers<[1], [0], [0], [1], [0, 0, 1, 1], [], []>} : vector<16x128xbf16>, vector<128x128xbf16>, vector<16x128xf32> -> vector<16x128xf32>
    %c0_9 = arith.constant 0 : index
    %c0_10 = arith.constant 0 : index
    %12 = vector.load %arg5[%c0_9, %c0_10] : memref<1x128xf32, #tpu.memory_space<vmem>>, vector<1x128xf32>
    %13 = vector.broadcast %12 : vector<1x128xf32> to vector<16x128xf32>
    %14 = arith.addf %11, %13 : vector<16x128xf32>
    %cst_11 = arith.constant 0.000000e+00 : f32
    %15 = vector.broadcast %cst_11 : f32 to vector<16x128xf32>
    %16 = arith.maximumf %14, %15 : vector<16x128xf32>
    %17 = arith.truncf %16 : vector<16x128xf32> to vector<16x128xbf16>
    %c0_12 = arith.constant 0 : index
    %c0_13 = arith.constant 0 : index
    %18 = vector.load %arg6[%c0_12, %c0_13] : memref<128x128xbf16, #tpu.memory_space<vmem>>, vector<128x128xbf16>
    %cst_14 = arith.constant dense<0.000000e+00> : vector<16x128xf32>
    %19 = tpu.matmul %17, %18, %cst_14 {dimension_numbers = #tpu.dot_dimension_numbers<[1], [0], [0], [1], [0, 0, 1, 1], [], []>} : vector<16x128xbf16>, vector<128x128xbf16>, vector<16x128xf32> -> vector<16x128xf32>
    %c0_15 = arith.constant 0 : index
    %c0_16 = arith.constant 0 : index
    %20 = vector.load %arg7[%c0_15, %c0_16] : memref<1x128xf32, #tpu.memory_space<vmem>>, vector<1x128xf32>
    %21 = vector.broadcast %20 : vector<1x128xf32> to vector<16x128xf32>
    %22 = arith.addf %19, %21 : vector<16x128xf32>
    %cst_17 = arith.constant dense<0xFF800000> : vector<16xf32>
    %23 = vector.multi_reduction <maximumf>, %22, %cst_17 [1] : vector<16x128xf32> to vector<16xf32>
    %24 = vector.shape_cast %23 : vector<16xf32> to vector<16x1xf32>
    %25 = vector.broadcast %24 : vector<16x1xf32> to vector<16x128xf32>
    %26 = arith.subf %22, %25 : vector<16x128xf32>
    %27 = math.exp %26 : vector<16x128xf32>
    %cst_18 = arith.constant dense<0.000000e+00> : vector<16xf32>
    %28 = vector.multi_reduction <add>, %27, %cst_18 [1] : vector<16x128xf32> to vector<16xf32>
    %29 = vector.shape_cast %28 : vector<16xf32> to vector<16x1xf32>
    %30 = vector.broadcast %29 : vector<16x1xf32> to vector<16x128xf32>
    %31 = arith.divf %27, %30 : vector<16x128xf32>
    %32 = arith.truncf %31 : vector<16x128xf32> to vector<16x128xbf16>
    %c0_19 = arith.constant 0 : index
    %c0_20 = arith.constant 0 : index
    %33 = vector.load %arg8[%c0_19, %c0_20] : memref<16x128xbf16, #tpu.memory_space<vmem>>, vector<16x128xbf16>
    tpu.vector_store %arg8[%c0_19, %c0_20], %32 {strides = array<i32>} : memref<16x128xbf16, #tpu.memory_space<vmem>>, vector<16x128xbf16>,
    return
  }
  func.func @transform_0(%arg0: i32) -> (i32, i32) {
    %c0_i32 = arith.constant 0 : i32
    %c0_i32_0 = arith.constant 0 : i32
    return %arg0, %c0_i32 : i32, i32
  }
  func.func @transform_1(%arg0: i32) -> (i32, i32) {
    %c0_i32 = arith.constant 0 : i32
    %c0_i32_0 = arith.constant 0 : i32
    %c0_i32_1 = arith.constant 0 : i32
    return %c0_i32, %c0_i32_0 : i32, i32
  }
  func.func @transform_2(%arg0: i32) -> (i32, i32) {
    %c0_i32 = arith.constant 0 : i32
    %c0_i32_0 = arith.constant 0 : i32
    %c0_i32_1 = arith.constant 0 : i32
    return %c0_i32, %c0_i32_0 : i32, i32
  }
  func.func @transform_3(%arg0: i32) -> (i32, i32) {
    %c0_i32 = arith.constant 0 : i32
    %c0_i32_0 = arith.constant 0 : i32
    %c0_i32_1 = arith.constant 0 : i32
    return %c0_i32, %c0_i32_0 : i32, i32
  }
  func.func @transform_4(%arg0: i32) -> (i32, i32) {
    %c0_i32 = arith.constant 0 : i32
    %c0_i32_0 = arith.constant 0 : i32
    %c0_i32_1 = arith.constant 0 : i32
    return %c0_i32, %c0_i32_0 : i32, i32
  }
  func.func @transform_5(%arg0: i32) -> (i32, i32) {
    %c0_i32 = arith.constant 0 : i32
    %c0_i32_0 = arith.constant 0 : i32
    %c0_i32_1 = arith.constant 0 : i32
    return %c0_i32, %c0_i32_0 : i32, i32
  }
  func.func @transform_6(%arg0: i32) -> (i32, i32) {
    %c0_i32 = arith.constant 0 : i32
    %c0_i32_0 = arith.constant 0 : i32
    %c0_i32_1 = arith.constant 0 : i32
    return %c0_i32, %c0_i32_0 : i32, i32
  }
  func.func @transform_7(%arg0: i32) -> (i32, i32) {
    %c0_i32 = arith.constant 0 : i32
    %c0_i32_0 = arith.constant 0 : i32
    return %arg0, %c0_i32 : i32, i32
  }
}

</mosaic_0001>

<bundles_post_ra>
// kernel: net_forward.1
= control target key start
LH: loop header
LB: loop body
LE: loop exit
PB: predicated region body
PF: predicated region fallthrough
CT: control target
= control target key end

     0   :  { %12 = vsyncpa [#allocation3], 0  ;;  %s1420_s0 = inlined_call_operand.hbm [shape: f32[16,784], index: 0, kind: input, shape index: {}]   ;;  %s1421_s1 = inlined_call_operand.hbm [shape: bf16[784,128], index: 1, kind: input, shape index: {}]   ;;  %s1422_s2 = inlined_call_operand.vmem [shape: f32[1,128], index: 2, kind: input, shape index: {}]   ;;  %s1423_s3 = inlined_call_operand.hbm [shape: bf16[128,128], index: 3, kind: input, shape index: {}]   ;;  %s1424_s4 = inlined_call_operand.vmem [shape: f32[1,128], index: 4, kind: input, shape index: {}]   ;;  %s1425_s5 = inlined_call_operand.hbm [shape: bf16[128,128], index: 5, kind: input, shape index: {}]   ;;  %s1426_s6 = inlined_call_operand.vmem [shape: f32[1,128], index: 6, kind: input, shape index: {}]   ;;  %s1427_s7 = inlined_call_operand.vmem [shape: bf16[16,128], index: 7, kind: output, shape index: {}]  }
   0x1   :  { %13 = vsyncpa [#allocation5], 0 }
   0x2   :  { %14 = vsyncpa [#allocation8], 0  ;;  %s1314_s24 = smov [#allocation4]  }
   0x3   :  { %s32_s25 = sshll.u32 %s1314_s24, 4  ;;  %s33_s25 = int_to_ptr.vmem [resolvable:$true] %s32_s25 }
   0x4   :  { %s1236_s26 = scalar_lea.vmem %s33_s25, 6272  ;;  %p1241_p1 = scmp.lt.s32.totalorder %s33_s25, %s33_s25 }
   0x5   :  { %p1237_p0 = scmp.ne.s32.totalorder %s33_s25, %s1236_s26  ;;  %p1242_p2 = scmp.lt.s32.totalorder %s1236_s26, %s1236_s26 }
   0x7   :  { %p1243_p3 = por %p1242_p2, %p1241_p1 }
   0x9   :  { %p1244_p4 = pnand %p1243_p3, %p1237_p0 }
   0xb   :  { %1247 = shalt.err (!%p1244_p4)
}
   0xc   :  { %s1315_s27 = smov 64   ;;  %s1316_s28 = smov 4  }
   0xd   :  { %38 = dma.hbm_to_vmem [thread:$0]  %s1421_s1, 6272, %s33_s25, [#allocation5], %s1315_s27, %s1315_s27, %s1316_s28  }
   0xe   :  { %s1317_s8 = smov [#allocation2]  }
   0xf   :  { %s20_s9 = sshll.u32 %s1317_s8, 4  ;;  %s21_s9 = int_to_ptr.vmem [resolvable:$true] %s20_s9 }
  0x10   :  { %s1256_s10 = scalar_lea.vmem %s21_s9, 1792  ;;  %p1261_p6 = scmp.lt.s32.totalorder %s21_s9, %s21_s9 }
  0x11   :  { %p1257_p5 = scmp.ne.s32.totalorder %s21_s9, %s1256_s10  ;;  %p1262_p7 = scmp.lt.s32.totalorder %s1256_s10, %s1256_s10 }
  0x13   :  { %p1263_p8 = por %p1262_p7, %p1261_p6 }
  0x15   :  { %p1264_p9 = pnand %p1263_p8, %p1257_p5 }
  0x17   :  { %1267 = shalt.err (!%p1264_p9)
}
  0x18   :  { %s1318_s11 = smov 896   ;;  %s1319_s12 = smov 56  }
  0x19   :  { %26 = dma.hbm_to_vmem [thread:$0]  %s1420_s0, 1792, %s21_s9, [#allocation3], %s1318_s11, %s1318_s11, %s1319_s12  }
  0x1a   :  { %s1320_s15 = smov [#allocation6]   ;;  %s1321_s17 = smov [#allocation7]  }
  0x1b   :  { %s46_s16 = sshll.u32 %s1320_s15, 4  ;;  %s60_s1 = sshll.u32 %s1321_s17, 4  ;;  %s47_s16 = int_to_ptr.vmem [resolvable:$true] %s46_s16  ;;  %s61_s1 = int_to_ptr.vmem [resolvable:$true] %s60_s1 }
  0x1c   :  { %s1276_s18 = scalar_lea.vmem %s47_s16, 1024  ;;  %p1281_p11 = scmp.lt.s32.totalorder %s47_s16, %s47_s16 }
  0x1d   :  { %p1277_p10 = scmp.ne.s32.totalorder %s47_s16, %s1276_s18  ;;  %p1282_p12 = scmp.lt.s32.totalorder %s1276_s18, %s1276_s18 }
  0x1f   :  { %p1283_p13 = por %p1282_p12, %p1281_p11 }
  0x21   :  { %p1284_p0 = pnand %p1283_p13, %p1277_p10 }
  0x23   :  { %1287 = shalt.err (!%p1284_p0)
}
  0x24   :  { %52 = dma.hbm_to_vmem [thread:$0]  %s1423_s3, 1024, %s47_s16, [#allocation5], %s1315_s27, %s1315_s27, %s1316_s28  }
  0x25   :  { %s1296_s0 = scalar_lea.vmem %s61_s1, 1024  ;;  %p1301_p2 = scmp.lt.s32.totalorder %s61_s1, %s61_s1 }
  0x26   :  { %p1297_p1 = scmp.ne.s32.totalorder %s61_s1, %s1296_s0  ;;  %p1302_p3 = scmp.lt.s32.totalorder %s1296_s0, %s1296_s0 }
  0x28   :  { %p1303_p4 = por %p1302_p3, %p1301_p2 }
  0x2a   :  { %p1304_p5 = pnand %p1303_p4, %p1297_p1 }
  0x2c   :  { %1307 = shalt.err (!%p1304_p5)
}
  0x2d   :  { %66 = dma.hbm_to_vmem [thread:$0]  %s1425_s5, 1024, %s61_s1, [#allocation8], %s1315_s27, %s1315_s27, %s1316_s28  }
  0x2e   :  { %1308 = dma.done.wait [#allocation3], 1792  }
  0x2f   :  { %1309 = vsyncadd [#allocation3], 4294965504 }
  0x30   :  { %1310 = dma.done.wait [#allocation5], 7296  }
  0x31   :  { %1311 = vsyncadd [#allocation5], 4294960000 }
  0x32   :  { %1312 = dma.done.wait [#allocation8], 1024  }
  0x33   :  { %1313 = vsyncadd [#allocation8], 4294966272  ;;  %v1155_v0 = vld [vmem:[#allocation4 + $0x78] sm:$0xff]   ;;  %v1159_v4 = vld [vmem:[#allocation4 + $0x70] sm:$0xff]   ;;  %v1322_v43 = vmov 0.0   ;;  %vm1323_vm0 = vmmov 0  }
  0x34   :  { %v1156_v1 = vld [vmem:[#allocation4 + $0x38] sm:$0xff]   ;;  %1013 = vmatprep.subr.bf16.mxu0 %v1155_v0  ;;  %v1160_v5 = vld [vmem:[#allocation4 + $0x30] sm:$0xff]   ;;  %v1163_v8 = vld [vmem:[#allocation4 + $0x68] sm:$0xff]   ;;  %vm502_vm1 = vcmask 130048  }
  0x35   :  { %v1157_v2 = vld [vmem:[#allocation4 + $0xf8] sm:$0xff]   ;;  %1014 = vmatpush3.bf16.msra.mxu0 %v1156_v1  ;;  %v1161_v6 = vld [vmem:[#allocation4 + $0xf0] sm:$0xff]   ;;  %v1164_v9 = vld [vmem:[#allocation4 + $0x28] sm:$0xff]  }
  0x36   :  { %v1158_v3 = vld [vmem:[#allocation4 + $0xb8] sm:$0xff]   ;;  %1035 = vmatprep.subr.bf16.mxu1 %v1157_v2  ;;  %1015 = vmatprep.subr.bf16.mxu0 %v1159_v4  ;;  %v1162_v7 = vld [vmem:[#allocation4 + $0xb0] sm:$0xff]   ;;  %v1165_v10 = vld [vmem:[#allocation4 + $0xe8] sm:$0xff]  }
  0x37   :  { %1036 = vmatpush3.bf16.msra.mxu1 %v1158_v3  ;;  %v1166_v11 = vld [vmem:[#allocation4 + $0xa8] sm:$0xff]   ;;  %v1167_v12 = vld [vmem:[#allocation4 + $0x60] sm:$0xff]   ;;  %v1171_v16 = vld [vmem:[#allocation4 + $0x58] sm:$0xff]  }
  0x38   :  { %1037 = vmatprep.subr.bf16.mxu1 %v1161_v6  ;;  %v1168_v13 = vld [vmem:[#allocation4 + $0x20] sm:$0xff]   ;;  %v1172_v17 = vld [vmem:[#allocation4 + $0x18] sm:$0xff]   ;;  %v1175_v20 = vld [vmem:[#allocation4 + $0x50] sm:$0xff]  }
  0x39   :  { %1016 = vmatpush3.bf16.msra.mxu0 %v1160_v5  ;;  %v1169_v14 = vld [vmem:[#allocation4 + $0xe0] sm:$0xff]   ;;  %v1173_v18 = vld [vmem:[#allocation4 + $0xd8] sm:$0xff]   ;;  %v1176_v21 = vld [vmem:[#allocation4 + $0x10] sm:$0xff]  }
  0x3a   :  { %1017 = vmatprep.subr.bf16.mxu0 %v1163_v8  ;;  %v1170_v15 = vld [vmem:[#allocation4 + $0xa0] sm:$0xff]   ;;  %v1174_v19 = vld [vmem:[#allocation4 + $0x98] sm:$0xff]   ;;  %v1177_v22 = vld [vmem:[#allocation4 + $0xd0] sm:$0xff]  }
  0x3b   :  { %1038 = vmatpush3.bf16.msra.mxu1 %v1162_v7  ;;  %v1178_v23 = vld [vmem:[#allocation4 + $0x90] sm:$0xff]   ;;  %v1179_v24 = vld [vmem:[#allocation4 + $0x48] sm:$0xff]   ;;  %v1183_v28 = vld [vmem:[#allocation4 + $0x40] sm:$0xff]  }
  0x3c   :  { %1039 = vmatprep.subr.bf16.mxu1 %v1165_v10  ;;  %v1180_v25 = vld [vmem:[#allocation4 + $0x8] sm:$0xff]   ;;  %v1184_v29 = vld [vmem:[#allocation4] sm:$0xff]   ;;  %v83_v31 = vld [vmem:[#allocation2 + $0x8] sm:$0xff] }
  0x3d   :  { %1018 = vmatpush3.bf16.msra.mxu0 %v1164_v9  ;;  %v1181_v26 = vld [vmem:[#allocation4 + $0xc8] sm:$0xff]   ;;  %v1185_v30 = vld [vmem:[#allocation4 + $0xc0] sm:$0xff]   ;;  %v90_v32 = vld [vmem:[#allocation2 + $0x40] sm:$0xff] }
  0x3e   :  { %1019 = vmatprep.subr.bf16.mxu0 %v1167_v12  ;;  %v1182_v27 = vld [vmem:[#allocation4 + $0x88] sm:$0xff]   ;;  %v97_v33 = vpack.c.bf16 %v90_v32, %v83_v31  ;;  %v1186_v34 = vld [vmem:[#allocation4 + $0x80] sm:$0xff]   ;;  %v82_v35 = vld [vmem:[#allocation2] sm:$0xff] }
  0x3f   :  { %1040 = vmatpush3.bf16.msra.mxu1 %v1166_v11  ;;  %v89_v36 = vld [vmem:[#allocation2 + $0x38] sm:$0xff]  ;;  %v1187_v38 = vld [vmem:[#allocation4 + $0x178] sm:$0xff]   ;;  %v92_v40 = vld [vmem:[#allocation2 + $0x50] sm:$0xff] }
  0x40   :  { %1041 = vmatprep.subr.bf16.mxu1 %v1169_v14  ;;  %538 = vmatprep.mubr.bf16.mxu0 %v97_v33  ;;  %v96_v37 = vpack.c.bf16 %v89_v36, %v82_v35  ;;  %v85_v39 = vld [vmem:[#allocation2 + $0x18] sm:$0xff]  ;;  %v1188_v42 = vld [vmem:[#allocation4 + $0x138] sm:$0xff]   ;;  %v84_v44 = vld [vmem:[#allocation2 + $0x10] sm:$0xff] }
  0x41   :  { %1020 = vmatpush3.bf16.msra.mxu0 %v1168_v13  ;;  %v99_v41 = vpack.c.bf16 %v92_v40, %v85_v39  ;;  %v91_v45 = vld [vmem:[#allocation2 + $0x48] sm:$0xff]  ;;  %v1189_v47 = vld [vmem:[#allocation4 + $0x170] sm:$0xff]   ;;  %v1191_v49 = vld [vmem:[#allocation4 + $0x168] sm:$0xff]  }
  0x42   :  { %1021 = vmatprep.subr.bf16.mxu0 %v1171_v16  ;;  %v98_v46 = vpack.c.bf16 %v91_v45, %v84_v44  ;;  %v1190_v48 = vld [vmem:[#allocation4 + $0x130] sm:$0xff]   ;;  %v1192_v50 = vld [vmem:[#allocation4 + $0x128] sm:$0xff]   ;;  %v1193_v51 = vld [vmem:[#allocation4 + $0x160] sm:$0xff]  }
  0x43   :  { %1042 = vmatpush3.bf16.msra.mxu1 %v1170_v15  ;;  %579 = vmatprep.mubr.bf16.mxu1 %v99_v41  ;;  %v1194_v52 = vld [vmem:[#allocation4 + $0x120] sm:$0xff]   ;;  %v1195_v53 = vld [vmem:[#allocation4 + $0x158] sm:$0xff]   ;;  %v1197_v55 = vld [vmem:[#allocation4 + $0x150] sm:$0xff]  }
  0x44   :  { %1043 = vmatprep.subr.bf16.mxu1 %v1173_v18  ;;  %v1196_v54 = vld [vmem:[#allocation4 + $0x118] sm:$0xff]   ;;  %v1203_v56 = vld [vmem:[#allocation4 + $0x180] sm:$0xff]   ;;  %v1198_v58 = vld [vmem:[#allocation4 + $0x110] sm:$0xff]  }
  0x45   :  { %1022 = vmatpush3.bf16.msra.mxu0 %v1172_v17  ;;  %v87_v57 = vld [vmem:[#allocation2 + $0x28] sm:$0xff]  ;;  %v1199_v59 = vld [vmem:[#allocation4 + $0x148] sm:$0xff]   ;;  %v94_v60 = vld [vmem:[#allocation2 + $0x60] sm:$0xff] }
  0x46   :  { %1023 = vmatprep.subr.bf16.mxu0 %v1175_v20  ;;  %v101_v61 = vpack.c.bf16 %v94_v60, %v87_v57  ;;  %v88_v62 = vld [vmem:[#allocation2 + $0x30] sm:$0xff]  ;;  %v95_v63 = vld [vmem:[#allocation2 + $0x68] sm:$0xff]  ;;  %v1200_v1 = vld [vmem:[#allocation4 + $0x108] sm:$0xff]  }
  0x47   :  { %1044 = vmatpush3.bf16.msra.mxu1 %v1174_v19  ;;  %v102_v0 = vpack.c.bf16 %v95_v63, %v88_v62  ;;  %v1201_v2 = vld [vmem:[#allocation4 + $0x140] sm:$0xff]   ;;  %v86_v4 = vld [vmem:[#allocation2 + $0x20] sm:$0xff]  ;;  %v93_v5 = vld [vmem:[#allocation2 + $0x58] sm:$0xff] }
  0x48   :  { %1045 = vmatprep.subr.bf16.mxu1 %v1177_v22  ;;  %v1202_v3 = vld [vmem:[#allocation4 + $0x100] sm:$0xff]   ;;  %v100_v6 = vpack.c.bf16 %v93_v5, %v86_v4  ;;  %v1205_v8 = vld [vmem:[#allocation6 + $0x30] sm:$0xff]   ;;  %v1206_v9 = vld [vmem:[#allocation6 + $0x28] sm:$0xff]  }
  0x49   :  { %1024 = vmatpush3.bf16.msra.mxu0 %v1176_v21  ;;  %v1204_v7 = vld [vmem:[#allocation6 + $0x38] sm:$0xff]   ;;  %v1207_v10 = vld [vmem:[#allocation6 + $0x20] sm:$0xff]   ;;  %v1209_v12 = vld [vmem:[#allocation6 + $0x10] sm:$0xff]  }
  0x4a   :  { %1025 = vmatprep.subr.bf16.mxu0 %v1179_v24  ;;  %v1208_v11 = vld [vmem:[#allocation6 + $0x18] sm:$0xff]   ;;  %v1210_v13 = vld [vmem:[#allocation6 + $0x8] sm:$0xff]   ;;  %v1211_v14 = vld [vmem:[#allocation6] sm:$0xff]  }
  0x4b   :  { %1046 = vmatpush3.bf16.msra.mxu1 %v1178_v23  ;;  %v1212_v15 = vld [vmem:[#allocation7 + $0x38] sm:$0xff]   ;;  %v1213_v16 = vld [vmem:[#allocation7 + $0x30] sm:$0xff]   ;;  %v1214_v17 = vld [vmem:[#allocation7 + $0x28] sm:$0xff]  }
  0x4c   :  { %1047 = vmatprep.subr.bf16.mxu1 %v1181_v26  ;;  %v1215_v18 = vld [vmem:[#allocation7 + $0x20] sm:$0xff]   ;;  %v1216_v19 = vld [vmem:[#allocation7 + $0x18] sm:$0xff]   ;;  %v935_v32 = vld [vmem:[%s1422_s2] ss:$0 sm:$0xff] }
  0x4d   :  { %1026 = vmatpush3.bf16.msra.mxu0 %v1180_v25  ;;  %v1219_v57 = vld [vmem:[#allocation7] sm:$0xff]  }
  0x4e   :  { %1027 = vmatprep.subr.bf16.mxu0 %v1183_v28 }
  0x4f   :  { %1048 = vmatpush3.bf16.msra.mxu1 %v1182_v27 }
  0x50   :  { %1049 = vmatprep.subr.bf16.mxu1 %v1185_v30 }
  0x51   :  { %1028 = vmatpush3.bf16.msra.mxu0 %v1184_v29 }
  0x52   :  { %1057 = vmatprep.subr.bf16.mxu0 %v1187_v38 }
  0x53   :  { %1050 = vmatpush3.bf16.msra.mxu1 %v1186_v34 }
  0x54   :  { %1099 = vmatprep.subr.bf16.mxu1 %v1322_v43  ;;  %539 = vmatmul.mubr.bf16.vlgmr.msra.gmra.mxu0 %v96_v37 }
  0x55   :  { %1058 = vmatpush3.bf16.msra.mxu0 %v1188_v42  ;;  %620 = vmatprep.mubr.bf16.mxu0 %v101_v61 }
  0x56   :  { %580 = vmatmul.mubr.bf16.vlgmr.msra.gmra.mxu1 %v98_v46  ;;  %1059 = vmatprep.subr.bf16.mxu0 %v1189_v47 }
  0x57   :  { %1101 = vmatprep.mubr.msk.bf16.mxu1 %vm1323_vm0, %v1322_v43  ;;  %1100 = vmatpush3.bf16.msra.mxu1 %v1203_v56  ;;  %v1218_v56 = vld [vmem:[#allocation7 + $0x8] sm:$0xff]  }
  0x58   :  { %1105 = vmatprep.subr.bf16.mxu1 %v1322_v43 }
  0x59   :  { %1060 = vmatpush3.bf16.msra.mxu0 %v1190_v48 }
  0x5a   :  { %1061 = vmatprep.subr.bf16.mxu0 %v1191_v49 }
  0x5d   :  { %1062 = vmatpush3.bf16.msra.mxu0 %v1192_v50 }
  0x5e   :  { %1063 = vmatprep.subr.bf16.mxu0 %v1193_v51  ;;  %1102 = vmatmul.mubr.msk.bf16.vlgmr.msra.gmra.mxu1 %vm502_vm1, %v102_v0 }
  0x5f   :  { %1121 = vmatprep.mubr.msk.bf16.mxu1 %vm1323_vm0, %v1322_v43  ;;  %1106 = vmatpush3.bf16.msra.mxu1 %v1204_v7 }
  0x60   :  { %1107 = vmatprep.subr.bf16.mxu1 %v1322_v43 }
  0x61   :  { %1064 = vmatpush3.bf16.msra.mxu0 %v1194_v52 }
  0x62   :  { %1065 = vmatprep.subr.bf16.mxu0 %v1195_v53 }
  0x63   :  { %1108 = vmatpush3.bf16.msra.mxu1 %v1205_v8 }
  0x64   :  { %1109 = vmatprep.subr.bf16.mxu1 %v1322_v43 }
  0x65   :  { %1066 = vmatpush3.bf16.msra.mxu0 %v1196_v54 }
  0x66   :  { %1067 = vmatprep.subr.bf16.mxu0 %v1197_v55  ;;  %v1217_v55 = vld [vmem:[#allocation7 + $0x10] sm:$0xff]  }
  0x67   :  { %1110 = vmatpush3.bf16.msra.mxu1 %v1206_v9 }
  0x68   :  { %1111 = vmatprep.subr.bf16.mxu1 %v1322_v43 }
  0x69   :  { %1068 = vmatpush3.bf16.msra.mxu0 %v1198_v58  ;;  %v986_v58 = vld [vmem:[%s1424_s4] ss:$0 sm:$0xff] }
  0x6a   :  { %1069 = vmatprep.subr.bf16.mxu0 %v1199_v59 }
  0x6b   :  { %1112 = vmatpush3.bf16.msra.mxu1 %v1207_v10 }
  0x6c   :  { %1113 = vmatprep.subr.bf16.mxu1 %v1322_v43 }
  0x6d   :  { %1070 = vmatpush3.bf16.msra.mxu0 %v1200_v1 }
  0x6e   :  { %1071 = vmatprep.subr.bf16.mxu0 %v1201_v2 }
  0x6f   :  { %1114 = vmatpush3.bf16.msra.mxu1 %v1208_v11 }
  0x70   :  { %1115 = vmatprep.subr.bf16.mxu1 %v1322_v43 }
  0x71   :  { %1072 = vmatpush3.bf16.msra.mxu0 %v1202_v3 }
  0x72   :  { %1125 = vmatprep.subr.bf16.mxu0 %v1322_v43 }
  0x73   :  { %1116 = vmatpush3.bf16.msra.mxu1 %v1209_v12 }
  0x74   :  { %621 = vmatmul.mubr.bf16.vlgmr.msra.gmra.mxu0 %v100_v6  ;;  %1117 = vmatprep.subr.bf16.mxu1 %v1322_v43 }
  0x75   :  { %1141 = vmatprep.mubr.msk.bf16.mxu0 %vm1323_vm0, %v1322_v43  ;;  %1126 = vmatpush3.bf16.msra.mxu0 %v1212_v15 }
  0x76   :  { %1127 = vmatprep.subr.bf16.mxu0 %v1322_v43 }
  0x77   :  { %1118 = vmatpush3.bf16.msra.mxu1 %v1210_v13 }
  0x78   :  { %1119 = vmatprep.subr.bf16.mxu1 %v1322_v43 }
  0x79   :  { %1128 = vmatpush3.bf16.msra.mxu0 %v1213_v16 }
  0x7a   :  { %1129 = vmatprep.subr.bf16.mxu0 %v1322_v43 }
  0x7b   :  { %1120 = vmatpush3.bf16.msra.mxu1 %v1211_v14 }
  0x7d   :  { %1130 = vmatpush3.bf16.msra.mxu0 %v1214_v17 }
  0x7e   :  { %1131 = vmatprep.subr.bf16.mxu0 %v1322_v43 }
  0x81   :  { %1132 = vmatpush3.bf16.msra.mxu0 %v1215_v18 }
  0x82   :  { %1133 = vmatprep.subr.bf16.mxu0 %v1322_v43 }
  0x85   :  { %1134 = vmatpush3.bf16.msra.mxu0 %v1216_v19 }
  0x86   :  { %1135 = vmatprep.subr.bf16.mxu0 %v1322_v43 }
  0x89   :  { %1136 = vmatpush3.bf16.msra.mxu0 %v1217_v55 }
  0x8a   :  { %1137 = vmatprep.subr.bf16.mxu0 %v1322_v43 }
  0x8d   :  { %1138 = vmatpush3.bf16.msra.mxu0 %v1218_v56 }
  0x8e   :  { %1139 = vmatprep.subr.bf16.mxu0 %v1322_v43  ;;  %v995_v43 = vld [vmem:[%s1426_s6] ss:$0 sm:$0xff] }
  0x91   :  { %1140 = vmatpush3.bf16.msra.mxu0 %v1219_v57 }
 0x114   :  { %v1029_v23 = vpop.f32.mrf.mxu0 }
 0x116   :  { %v1051_v20 = vpop.f32.mrf.mxu1  ;;  %v1030_v25 = vpop.f32.mrf.mxu0 }
 0x117   :  { %v1031_v31 = vadd.f32 %v1030_v25, %v1029_v23 }
 0x118   :  { %v1052_v21 = vpop.f32.mrf.mxu1  ;;  %v1032_v28 = vpop.f32.mrf.mxu0 }
 0x119   :  { %v541_v34 = vadd.f32 %v1031_v31, %v935_v32  ;;  %v1053_v35 = vadd.f32 %v1052_v21, %v1051_v20 }
 0x11a   :  { %v1054_v22 = vpop.f32.mrf.mxu1  ;;  %v1033_v33 = vpop.f32.mrf.mxu0 }
 0x11b   :  { %v1034_v36 = vadd.f32 %v1033_v33, %v1032_v28  ;;  %v582_v39 = vadd.f32 %v1053_v35, %v541_v34 }
 0x11c   :  { %v1055_v24 = vpop.f32.mrf.mxu1 }
 0x11d   :  { %v544_v40 = vadd.f32 %v1034_v36, %v935_v32  ;;  %v1056_v41 = vadd.f32 %v1055_v24, %v1054_v22 }
 0x11e   :  { %v663_v26 = vpop.f32.mrf.mxu1 }
 0x11f   :  { %v585_v47 = vadd.f32 %v1056_v41, %v544_v40 }
 0x120   :  { %v1103_v27 = vpop.f32.mrf.mxu1 }
 0x122   :  { %v666_v29 = vpop.f32.mrf.mxu1 }
 0x124   :  { %v1104_v30 = vpop.f32.mrf.mxu1 }
 0x134   :  { %v1073_v37 = vpop.f32.mrf.mxu0 }
 0x136   :  { %v1074_v38 = vpop.f32.mrf.mxu0 }
 0x137   :  { %v1075_v42 = vadd.f32 %v1074_v38, %v1073_v37 }
 0x138   :  { %v1076_v44 = vpop.f32.mrf.mxu0 }
 0x139   :  { %v623_v45 = vadd.f32 %v1075_v42, %v582_v39 }
 0x13a   :  { %v1077_v46 = vpop.f32.mrf.mxu0 }
 0x13b   :  { %v1078_v48 = vadd.f32 %v1077_v46, %v1076_v44  ;;  %v664_v49 = vadd.f32 %v663_v26, %v623_v45 }
 0x13d   :  { %v626_v50 = vadd.f32 %v1078_v48, %v585_v47  ;;  %v670_v52 = vmax.f32 %v664_v49, 0.0 }
 0x13f   :  { %v667_v51 = vadd.f32 %v666_v29, %v626_v50 }
 0x141   :  { %v671_v53 = vmax.f32 %v667_v51, 0.0 }
 0x143   :  { %v672_v54 = vpack.c.bf16 %v671_v53, %v670_v52 }
 0x145   :  { %1122 = vmatmul.mubr.bf16.vlgmr.msra.gmra.mxu1 %v672_v54 }
 0x205   :  { %v778_v59 = vpop.f32.mrf.mxu1 }
 0x206   :  { %v779_v61 = vadd.f32 %v986_v58, %v778_v59 }
 0x207   :  { %v1123_v60 = vpop.f32.mrf.mxu1 }
 0x208   :  { %v785_v1 = vmax.f32 %v779_v61, 0.0 }
 0x209   :  { %v781_v62 = vpop.f32.mrf.mxu1 }
 0x20a   :  { %v782_v63 = vadd.f32 %v986_v58, %v781_v62 }
 0x20b   :  { %v1124_v0 = vpop.f32.mrf.mxu1 }
 0x20c   :  { %v786_v2 = vmax.f32 %v782_v63, 0.0 }
 0x20e   :  { %v787_v3 = vpack.c.bf16 %v786_v2, %v785_v1 }
 0x210   :  { %1142 = vmatmul.mubr.bf16.vlgmr.msra.gmra.mxu0 %v787_v3 }
 0x2d0   :  { %v893_v4 = vpop.f32.mrf.mxu0 }
 0x2d1   :  { %v894_v5 = vadd.f32 %v995_v43, %v893_v4 }
 0x2d2   :  { %v1143_v6 = vpop.f32.mrf.mxu0 }
 0x2d3   :  { %900 = vmax.xlane.f32.xlu0 %v894_v5 }
 0x2d4   :  { %v896_v7 = vpop.f32.mrf.mxu0 }
 0x2d5   :  { %v897_v8 = vadd.f32 %v995_v43, %v896_v7 }
 0x2d6   :  { %v1144_v9 = vpop.f32.mrf.mxu0 }
 0x2d7   :  { %902 = vmax.xlane.f32.xlu0 %v897_v8 }
 0x35c   :  { %v901_v10 = vpop.xlane.xlu0 %900 }
 0x35d   :  { %v904_v11 = vsub.f32 %v894_v5, %v901_v10 }
 0x35f   :  { %v906_v12 = vmul.f32 1.442695, %v904_v11 }
 0x360   :  { %v903_v13 = vpop.xlane.xlu0 %902 }
 0x361   :  { %1220 = vpow2.f32 %v906_v12  ;;  %v905_v14 = vsub.f32 %v897_v8, %v903_v13 }
 0x363   :  { %v908_v15 = vmul.f32 1.442695, %v905_v14 }
 0x365   :  { %1222 = vpow2.f32 %v908_v15 }
 0x36e   :  { %v1221_v16 = vpop.eup %1220 }
 0x36f   :  { %910 = vadd.xlane.f32.xlu1 %v1221_v16 }
 0x372   :  { %v1223_v17 = vpop.eup %1222 }
 0x373   :  { %912 = vadd.xlane.f32.xlu1 %v1223_v17 }
 0x3f8   :  { %v911_v18 = vpop.xlane.xlu1 %910 }
 0x3f9   :  { %1224 = vrcp.f32 %v911_v18 }
 0x3fc   :  { %v913_v19 = vpop.xlane.xlu1 %912 }
 0x3fd   :  { %1226 = vrcp.f32 %v913_v19 }
 0x406   :  { %v1225_v20 = vpop.eup %1224 }
 0x407   :  { %v915_v22 = vmul.f32 %v1225_v20, %v1221_v16 }
 0x40a   :  { %v1227_v21 = vpop.eup %1226 }
 0x40b   :  { %v917_v23 = vmul.f32 %v1227_v21, %v1223_v17 }
 0x40d   :  { %v1011_v24 = vpack.c.bf16 %v917_v23, %v915_v22 }
 0x40f   :  { %1012 = vst [vmem:[%s1427_s7] sm:$0xff] %v1011_v24  }
 0x410   :  { %932 = vsyncpa [#allocation3], 1 }
 0x411   :  { %933 = vsyncpa [#allocation5], 1 }
 0x412   :  { %934 = vsyncpa [#allocation8], 1 }

</bundles_post_ra>
